<compile_context>
chip_gen: v7x
topology: tpu7x:2x2x1
jax: 0.10.0
libtpu: 0.0.40
codegen_flags: <defaults>
</compile_context>

<pallas_src>
import functools

import jax
import jax.numpy as jnp
from jax import lax
from jax.experimental import pallas as pl
from jax.experimental.pallas import tpu as pltpu


def _round_up(v, m):
    return ((v + m - 1) // m) * m


def _conv_taps_kernel(x_ref, w_ref, shift_ref, o_ref, *, offsets, relu, bn):
    """Fused conv (sum of tap-shifted matmuls) + BN shift + ReLU, one image.

    x_ref:     (C_in, L)         bf16  flattened zero-padded input (VMEM resident)
    w_ref:     (T, C_out, C_in)  bf16  per-tap weights, BN scale pre-folded
    shift_ref: (C_out, 1)        f32   BN shift = beta - mean * scale
    o_ref:     (C_out, M)        f32   lane-dense output tile (M % 128 == 0)
    """
    m = o_ref.shape[-1]
    if bn:
        # Seed the accumulator with the BN shift: saves one full-tile add.
        acc = jnp.broadcast_to(shift_ref[...], o_ref.shape)
    else:
        acc = jnp.zeros(o_ref.shape, jnp.float32)
    for t, off in enumerate(offsets):          # static unroll over kernel taps
        x_t = x_ref[:, off:off + m]            # (C_in, M) static VMEM slice
        acc = acc + jnp.dot(w_ref[t], x_t, preferred_element_type=jnp.float32)
    if relu:
        acc = jnp.maximum(acc, 0.0)
    o_ref[...] = acc


def _fused_matmul_call(x_flat, w_taps, shift2d, offsets, m_pad, relu, bn):
    """pallas_call wrapper: grid over batch, transposed lane-dense output."""
    n, c_eff, l = x_flat.shape
    t, c_out, _ = w_taps.shape

    kernel = functools.partial(_conv_taps_kernel, offsets=tuple(offsets),
                               relu=relu, bn=bn)

    flops = 2 * n * t * c_out * c_eff * m_pad
    bytes_accessed = (x_flat.size * 2 + w_taps.size * 2
                      + shift2d.size * 4 + n * c_out * m_pad * 4)

    # Per-step VMEM: double-buffered x / w / out blocks (+ tiny shift + acc).
    step_bytes = 2 * (c_eff * l * 2 + t * c_out * c_eff * 2
                      + c_out * 4 + c_out * m_pad * 4)
    vmem_limit = int(min(max(2 * step_bytes, 32 * 1024 * 1024),
                         48 * 1024 * 1024))

    return pl.pallas_call(
        kernel,
        out_shape=jax.ShapeDtypeStruct((n, c_out, m_pad), jnp.float32),
        grid_spec=pltpu.PrefetchScalarGridSpec(
            num_scalar_prefetch=0,
            grid=(n,),
            in_specs=[
                pl.BlockSpec((None, c_eff, l), lambda b: (b, 0, 0)),
                # Constant block index -> weights / shift stay VMEM-resident
                # across the batch grid (no re-DMA).
                pl.BlockSpec((t, c_out, c_eff), lambda b: (0, 0, 0)),
                pl.BlockSpec((c_out, 1), lambda b: (0, 0)),
            ],
            out_specs=pl.BlockSpec((None, c_out, m_pad), lambda b: (b, 0, 0)),
        ),
        compiler_params=pltpu.CompilerParams(
            dimension_semantics=("parallel",),
            vmem_limit_bytes=vmem_limit),
        cost_estimate=pl.CostEstimate(flops=flops, transcendentals=0,
                                      bytes_accessed=bytes_accessed),
    )(x_flat, w_taps, shift2d)


def basic_conv_forward(x, weight, gamma, beta, running_mean, running_var, *,
                       stride=1, padding=0, dilation=1, relu=True, bn=True,
                       eps=1e-5):
    """Pallas implementation of BasicConv.forward (groups=1, bias=False)."""
    n, c_in, h, w = x.shape
    c_out, c_in_w, kh, kw = weight.shape
    assert c_in_w == c_in, "groups != 1 not supported"

    s, p, d = stride, padding, dilation
    ho = (h + 2 * p - d * (kh - 1) - 1) // s + 1
    wo = (w + 2 * p - d * (kw - 1) - 1) // s + 1
    hp, wp = h + 2 * p, w + 2 * p

    # Fold eval-mode BN into per-channel scale/shift; fold scale into weight.
    if bn:
        scale = gamma / jnp.sqrt(running_var + eps)
        shift = beta - running_mean * scale
    else:
        scale = jnp.ones((c_out,), jnp.float32)
        shift = jnp.zeros((c_out,), jnp.float32)
    w_scaled = weight.astype(jnp.float32) * scale[:, None, None, None]
    shift2d = shift.reshape(c_out, 1).astype(jnp.float32)

    # Cast once (before padding) so all wrapper-side data movement is bf16.
    x_bf = x.astype(jnp.bfloat16)

    if s == 1:
        # Direct path (no HBM im2col): with stride 1 the input element feeding
        # output (ho_, wo_) at tap (i, j) sits at flat padded index
        #   (ho_ + i*d)*Wp + (wo_ + j*d) = m + (i*d*Wp + j*d),  m = ho_*Wp + wo_
        # so every tap is a contiguous slice of the flattened padded image.
        # Columns with wo_ >= Wo are row-wrap junk and get sliced off below.
        m_full = ho * wp
        m_pad = _round_up(m_full, 128)        # lane-dense output tile
        offsets = tuple(i * d * wp + j * d
                        for i in range(kh) for j in range(kw))
        l_req = m_pad + max(offsets)          # covers the largest read index
        # Single fused pad: spatial zero-pad + enough extra zero rows at the
        # bottom so every tap slice stays in-bounds (one HBM pass, not two).
        deficit = max(0, l_req - hp * wp)
        extra_h = -(-deficit // wp)           # ceil-div, 0 if no deficit
        x_pad = jnp.pad(x_bf, ((0, 0), (0, 0), (p, p + extra_h), (p, p)))
        l = (hp + extra_h) * wp
        x_flat = x_pad.reshape(n, c_in, l)
        w_taps = jnp.transpose(w_scaled, (2, 3, 0, 1)).reshape(
            kh * kw, c_out, c_in).astype(jnp.bfloat16)

        out = _fused_matmul_call(x_flat, w_taps, shift2d, offsets,
                                 m_pad, relu, bn)
        out = out[:, :, :m_full].reshape(n, c_out, ho, wp)[:, :, :, :wo]
    else:
        # Fallback for stride > 1: wrapper-side im2col (kh*kw x input traffic),
        # still fused matmul + BN + ReLU with a lane-dense transposed output.
        # TODO(synk): halo-tiled direct conv for stride > 1.
        x_pad = jnp.pad(x_bf, ((0, 0), (0, 0), (p, p), (p, p)))
        cols = []
        for i in range(kh):
            for j in range(kw):
                cols.append(x_pad[:, :, i * d:i * d + (ho - 1) * s + 1:s,
                                        j * d:j * d + (wo - 1) * s + 1:s])
        at = jnp.stack(cols, axis=2)                  # (N, C_in, T, Ho, Wo)
        at = at.reshape(n, c_in * kh * kw, ho * wo)   # K ordered (c_in, i, j)
        m_full = ho * wo
        m_pad = _round_up(m_full, 128)
        at = jnp.pad(at, ((0, 0), (0, 0), (0, m_pad - m_full)))
        w_mat = w_scaled.reshape(1, c_out, c_in * kh * kw).astype(jnp.bfloat16)

        out = _fused_matmul_call(at, w_mat, shift2d, (0,), m_pad, relu, bn)
        out = out[:, :, :m_full].reshape(n, c_out, ho, wo)

    return out


def _reference_forward(x, weight, gamma, beta, running_mean, running_var, *,
                       stride, padding, dilation, relu, bn, eps=1e-5,
                       emulate_bf16=False):
    """Pure-JAX reference. emulate_bf16 quantizes the matmul operands exactly
    like the Pallas kernel (bf16 inputs, f32 accumulation) for a tight check."""
    if bn:
        s = gamma / jnp.sqrt(running_var + eps)
        b = beta - running_mean * s
    else:
        s = jnp.ones((weight.shape[0],), jnp.float32)
        b = jnp.zeros((weight.shape[0],), jnp.float32)
    w_f = weight.astype(jnp.float32) * s[:, None, None, None]
    x_f = x.astype(jnp.float32)
    if emulate_bf16:
        w_f = w_f.astype(jnp.bfloat16).astype(jnp.float32)
        x_f = x_f.astype(jnp.bfloat16).astype(jnp.float32)
    y = lax.conv_general_dilated(
        x_f, w_f,
        window_strides=(stride, stride),
        padding=[(padding, padding), (padding, padding)],
        rhs_dilation=(dilation, dilation),
        dimension_numbers=("NCHW", "OIHW", "NCHW"))
    y = y + b[None, :, None, None]
    if relu:
        y = jnp.maximum(y, 0.0)
    return y


if __name__ == "__main__":
    # BasicConv(in_planes=4, out_planes=8, kernel_size=3, stride=1, padding=1,
    #           relu=True, bn=True, bias=False)
    N, C_IN, H, W = 2, 4, 16, 16
    C_OUT, KSIZE, STRIDE, PAD, DIL = 8, 3, 1, 1, 1

    key = jax.random.PRNGKey(0)
    k_x, k_w, k_g, k_b, k_m, k_v = jax.random.split(key, 6)

    x = jax.random.normal(k_x, (N, C_IN, H, W), dtype=jnp.float32)
    weight = jax.random.normal(k_w, (C_OUT, C_IN, KSIZE, KSIZE), jnp.float32) * 0.1
    gamma = jax.random.uniform(k_g, (C_OUT,), jnp.float32, 0.5, 1.5)
    beta = jax.random.normal(k_b, (C_OUT,), jnp.float32) * 0.1
    running_mean = jax.random.normal(k_m, (C_OUT,), jnp.float32) * 0.1
    running_var = jax.random.uniform(k_v, (C_OUT,), jnp.float32, 0.5, 1.5)

    out = basic_conv_forward(
        x, weight, gamma, beta, running_mean, running_var,
        stride=STRIDE, padding=PAD, dilation=DIL, relu=True, bn=True)
    out = jax.block_until_ready(out)

    # Reference with the same bf16 operand quantization (f32 accumulation), so
    # the comparison isolates kernel logic from the intentional bf16 rounding.
    ref = _reference_forward(
        x, weight, gamma, beta, running_mean, running_var,
        stride=STRIDE, padding=PAD, dilation=DIL, relu=True, bn=True,
        emulate_bf16=True)
    ref = jax.block_until_ready(ref)

    assert out.shape == (N, C_OUT, H, W), out.shape
    assert jnp.allclose(out, ref, atol=2e-3, rtol=2e-3), "mismatch vs reference"
    print("KERNEL_OK")
</pallas_src>

<mosaic_0001>
module attributes {stable_mosaic.version = 11 : i64} {
  func.func @_conv_taps_kernel(%arg0: i32, %arg1: memref<1x4x432xbf16, #tpu.memory_space<vmem>>, %arg2: memref<9x8x4xbf16, #tpu.memory_space<vmem>>, %arg3: memref<8x1xf32, #tpu.memory_space<vmem>>, %arg4: memref<1x8x384xf32, #tpu.memory_space<vmem>>) attributes {dimension_semantics = [#tpu.dimension_semantics<parallel>], iteration_bounds = array<i64: 2>, scalar_prefetch = 0 : i64, scratch_operands = 0 : i64, tpu.core_type = #tpu.core_type<tc>, window_params = [{transform_indices = @transform_0, window_bounds = array<i64: 1, 4, 432>}, {pipeline_mode = #tpu.pipeline_mode<synchronous>, transform_indices = @transform_1, window_bounds = array<i64: 9, 8, 4>}, {pipeline_mode = #tpu.pipeline_mode<synchronous>, transform_indices = @transform_2, window_bounds = array<i64: 8, 1>}, {transform_indices = @transform_3, window_bounds = array<i64: 1, 8, 384>}]} {
    %c0 = arith.constant 0 : index
    %c0_0 = arith.constant 0 : index
    %0 = vector.load %arg3[%c0, %c0_0] : memref<8x1xf32, #tpu.memory_space<vmem>>, vector<8x1xf32>
    %1 = vector.shape_cast %0 : vector<8x1xf32> to vector<8x1xf32>
    %2 = vector.broadcast %1 : vector<8x1xf32> to vector<8x384xf32>
    %c0_1 = arith.constant 0 : index
    %c0_2 = arith.constant 0 : index
    %c0_3 = arith.constant 0 : index
    %3 = vector.load %arg1[%c0_1, %c0_2, %c0_3] : memref<1x4x432xbf16, #tpu.memory_space<vmem>>, vector<1x4x384xbf16>
    %4 = vector.shape_cast %3 : vector<1x4x384xbf16> to vector<4x384xbf16>
    %c0_4 = arith.constant 0 : index
    %c0_5 = arith.constant 0 : index
    %c0_6 = arith.constant 0 : index
    %5 = vector.load %arg2[%c0_4, %c0_5, %c0_6] : memref<9x8x4xbf16, #tpu.memory_space<vmem>>, vector<1x8x4xbf16>
    %6 = vector.shape_cast %5 : vector<1x8x4xbf16> to vector<8x4xbf16>
    %cst = arith.constant dense<0.000000e+00> : vector<8x384xf32>
    %7 = tpu.matmul %6, %4, %cst {dimension_numbers = #tpu.dot_dimension_numbers<[1], [0], [0], [1], [0, 0, 1, 1], [], []>} : vector<8x4xbf16>, vector<4x384xbf16>, vector<8x384xf32> -> vector<8x384xf32>
    %8 = arith.addf %2, %7 : vector<8x384xf32>
    %c0_7 = arith.constant 0 : index
    %c0_8 = arith.constant 0 : index
    %c1 = arith.constant 1 : index
    %9 = vector.load %arg1[%c0_7, %c0_8, %c1] : memref<1x4x432xbf16, #tpu.memory_space<vmem>>, vector<1x4x384xbf16>
    %10 = vector.shape_cast %9 : vector<1x4x384xbf16> to vector<4x384xbf16>
    %c1_9 = arith.constant 1 : index
    %c0_10 = arith.constant 0 : index
    %c0_11 = arith.constant 0 : index
    %11 = vector.load %arg2[%c1_9, %c0_10, %c0_11] : memref<9x8x4xbf16, #tpu.memory_space<vmem>>, vector<1x8x4xbf16>
    %12 = vector.shape_cast %11 : vector<1x8x4xbf16> to vector<8x4xbf16>
    %cst_12 = arith.constant dense<0.000000e+00> : vector<8x384xf32>
    %13 = tpu.matmul %12, %10, %cst_12 {dimension_numbers = #tpu.dot_dimension_numbers<[1], [0], [0], [1], [0, 0, 1, 1], [], []>} : vector<8x4xbf16>, vector<4x384xbf16>, vector<8x384xf32> -> vector<8x384xf32>
    %14 = arith.addf %8, %13 : vector<8x384xf32>
    %c0_13 = arith.constant 0 : index
    %c0_14 = arith.constant 0 : index
    %c2 = arith.constant 2 : index
    %15 = vector.load %arg1[%c0_13, %c0_14, %c2] : memref<1x4x432xbf16, #tpu.memory_space<vmem>>, vector<1x4x384xbf16>
    %16 = vector.shape_cast %15 : vector<1x4x384xbf16> to vector<4x384xbf16>
    %c2_15 = arith.constant 2 : index
    %c0_16 = arith.constant 0 : index
    %c0_17 = arith.constant 0 : index
    %17 = vector.load %arg2[%c2_15, %c0_16, %c0_17] : memref<9x8x4xbf16, #tpu.memory_space<vmem>>, vector<1x8x4xbf16>
    %18 = vector.shape_cast %17 : vector<1x8x4xbf16> to vector<8x4xbf16>
    %cst_18 = arith.constant dense<0.000000e+00> : vector<8x384xf32>
    %19 = tpu.matmul %18, %16, %cst_18 {dimension_numbers = #tpu.dot_dimension_numbers<[1], [0], [0], [1], [0, 0, 1, 1], [], []>} : vector<8x4xbf16>, vector<4x384xbf16>, vector<8x384xf32> -> vector<8x384xf32>
    %20 = arith.addf %14, %19 : vector<8x384xf32>
    %c0_19 = arith.constant 0 : index
    %c0_20 = arith.constant 0 : index
    %c18 = arith.constant 18 : index
    %21 = vector.load %arg1[%c0_19, %c0_20, %c18] : memref<1x4x432xbf16, #tpu.memory_space<vmem>>, vector<1x4x384xbf16>
    %22 = vector.shape_cast %21 : vector<1x4x384xbf16> to vector<4x384xbf16>
    %c3 = arith.constant 3 : index
    %c0_21 = arith.constant 0 : index
    %c0_22 = arith.constant 0 : index
    %23 = vector.load %arg2[%c3, %c0_21, %c0_22] : memref<9x8x4xbf16, #tpu.memory_space<vmem>>, vector<1x8x4xbf16>
    %24 = vector.shape_cast %23 : vector<1x8x4xbf16> to vector<8x4xbf16>
    %cst_23 = arith.constant dense<0.000000e+00> : vector<8x384xf32>
    %25 = tpu.matmul %24, %22, %cst_23 {dimension_numbers = #tpu.dot_dimension_numbers<[1], [0], [0], [1], [0, 0, 1, 1], [], []>} : vector<8x4xbf16>, vector<4x384xbf16>, vector<8x384xf32> -> vector<8x384xf32>
    %26 = arith.addf %20, %25 : vector<8x384xf32>
    %c0_24 = arith.constant 0 : index
    %c0_25 = arith.constant 0 : index
    %c19 = arith.constant 19 : index
    %27 = vector.load %arg1[%c0_24, %c0_25, %c19] : memref<1x4x432xbf16, #tpu.memory_space<vmem>>, vector<1x4x384xbf16>
    %28 = vector.shape_cast %27 : vector<1x4x384xbf16> to vector<4x384xbf16>
    %c4 = arith.constant 4 : index
    %c0_26 = arith.constant 0 : index
    %c0_27 = arith.constant 0 : index
    %29 = vector.load %arg2[%c4, %c0_26, %c0_27] : memref<9x8x4xbf16, #tpu.memory_space<vmem>>, vector<1x8x4xbf16>
    %30 = vector.shape_cast %29 : vector<1x8x4xbf16> to vector<8x4xbf16>
    %cst_28 = arith.constant dense<0.000000e+00> : vector<8x384xf32>
    %31 = tpu.matmul %30, %28, %cst_28 {dimension_numbers = #tpu.dot_dimension_numbers<[1], [0], [0], [1], [0, 0, 1, 1], [], []>} : vector<8x4xbf16>, vector<4x384xbf16>, vector<8x384xf32> -> vector<8x384xf32>
    %32 = arith.addf %26, %31 : vector<8x384xf32>
    %c0_29 = arith.constant 0 : index
    %c0_30 = arith.constant 0 : index
    %c20 = arith.constant 20 : index
    %33 = vector.load %arg1[%c0_29, %c0_30, %c20] : memref<1x4x432xbf16, #tpu.memory_space<vmem>>, vector<1x4x384xbf16>
    %34 = vector.shape_cast %33 : vector<1x4x384xbf16> to vector<4x384xbf16>
    %c5 = arith.constant 5 : index
    %c0_31 = arith.constant 0 : index
    %c0_32 = arith.constant 0 : index
    %35 = vector.load %arg2[%c5, %c0_31, %c0_32] : memref<9x8x4xbf16, #tpu.memory_space<vmem>>, vector<1x8x4xbf16>
    %36 = vector.shape_cast %35 : vector<1x8x4xbf16> to vector<8x4xbf16>
    %cst_33 = arith.constant dense<0.000000e+00> : vector<8x384xf32>
    %37 = tpu.matmul %36, %34, %cst_33 {dimension_numbers = #tpu.dot_dimension_numbers<[1], [0], [0], [1], [0, 0, 1, 1], [], []>} : vector<8x4xbf16>, vector<4x384xbf16>, vector<8x384xf32> -> vector<8x384xf32>
    %38 = arith.addf %32, %37 : vector<8x384xf32>
    %c0_34 = arith.constant 0 : index
    %c0_35 = arith.constant 0 : index
    %c36 = arith.constant 36 : index
    %39 = vector.load %arg1[%c0_34, %c0_35, %c36] : memref<1x4x432xbf16, #tpu.memory_space<vmem>>, vector<1x4x384xbf16>
    %40 = vector.shape_cast %39 : vector<1x4x384xbf16> to vector<4x384xbf16>
    %c6 = arith.constant 6 : index
    %c0_36 = arith.constant 0 : index
    %c0_37 = arith.constant 0 : index
    %41 = vector.load %arg2[%c6, %c0_36, %c0_37] : memref<9x8x4xbf16, #tpu.memory_space<vmem>>, vector<1x8x4xbf16>
    %42 = vector.shape_cast %41 : vector<1x8x4xbf16> to vector<8x4xbf16>
    %cst_38 = arith.constant dense<0.000000e+00> : vector<8x384xf32>
    %43 = tpu.matmul %42, %40, %cst_38 {dimension_numbers = #tpu.dot_dimension_numbers<[1], [0], [0], [1], [0, 0, 1, 1], [], []>} : vector<8x4xbf16>, vector<4x384xbf16>, vector<8x384xf32> -> vector<8x384xf32>
    %44 = arith.addf %38, %43 : vector<8x384xf32>
    %c0_39 = arith.constant 0 : index
    %c0_40 = arith.constant 0 : index
    %c37 = arith.constant 37 : index
    %45 = vector.load %arg1[%c0_39, %c0_40, %c37] : memref<1x4x432xbf16, #tpu.memory_space<vmem>>, vector<1x4x384xbf16>
    %46 = vector.shape_cast %45 : vector<1x4x384xbf16> to vector<4x384xbf16>
    %c7 = arith.constant 7 : index
    %c0_41 = arith.constant 0 : index
    %c0_42 = arith.constant 0 : index
    %47 = vector.load %arg2[%c7, %c0_41, %c0_42] : memref<9x8x4xbf16, #tpu.memory_space<vmem>>, vector<1x8x4xbf16>
    %48 = vector.shape_cast %47 : vector<1x8x4xbf16> to vector<8x4xbf16>
    %cst_43 = arith.constant dense<0.000000e+00> : vector<8x384xf32>
    %49 = tpu.matmul %48, %46, %cst_43 {dimension_numbers = #tpu.dot_dimension_numbers<[1], [0], [0], [1], [0, 0, 1, 1], [], []>} : vector<8x4xbf16>, vector<4x384xbf16>, vector<8x384xf32> -> vector<8x384xf32>
    %50 = arith.addf %44, %49 : vector<8x384xf32>
    %c0_44 = arith.constant 0 : index
    %c0_45 = arith.constant 0 : index
    %c38 = arith.constant 38 : index
    %51 = vector.load %arg1[%c0_44, %c0_45, %c38] : memref<1x4x432xbf16, #tpu.memory_space<vmem>>, vector<1x4x384xbf16>
    %52 = vector.shape_cast %51 : vector<1x4x384xbf16> to vector<4x384xbf16>
    %c8 = arith.constant 8 : index
    %c0_46 = arith.constant 0 : index
    %c0_47 = arith.constant 0 : index
    %53 = vector.load %arg2[%c8, %c0_46, %c0_47] : memref<9x8x4xbf16, #tpu.memory_space<vmem>>, vector<1x8x4xbf16>
    %54 = vector.shape_cast %53 : vector<1x8x4xbf16> to vector<8x4xbf16>
    %cst_48 = arith.constant dense<0.000000e+00> : vector<8x384xf32>
    %55 = tpu.matmul %54, %52, %cst_48 {dimension_numbers = #tpu.dot_dimension_numbers<[1], [0], [0], [1], [0, 0, 1, 1], [], []>} : vector<8x4xbf16>, vector<4x384xbf16>, vector<8x384xf32> -> vector<8x384xf32>
    %56 = arith.addf %50, %55 : vector<8x384xf32>
    %cst_49 = arith.constant 0.000000e+00 : f32
    %57 = vector.broadcast %cst_49 : f32 to vector<8x384xf32>
    %58 = arith.maximumf %56, %57 : vector<8x384xf32>
    %c0_50 = arith.constant 0 : index
    %c0_51 = arith.constant 0 : index
    %c0_52 = arith.constant 0 : index
    %59 = vector.load %arg4[%c0_50, %c0_51, %c0_52] : memref<1x8x384xf32, #tpu.memory_space<vmem>>, vector<1x8x384xf32>
    %60 = vector.shape_cast %59 : vector<1x8x384xf32> to vector<8x384xf32>
    %61 = vector.shape_cast %58 : vector<8x384xf32> to vector<1x8x384xf32>
    tpu.vector_store %arg4[%c0_50, %c0_51, %c0_52], %61 {strides = array<i32>} : memref<1x8x384xf32, #tpu.memory_space<vmem>>, vector<1x8x384xf32>,
    return
  }
  func.func @transform_0(%arg0: i32) -> (i32, i32, i32) {
    %c0_i32 = arith.constant 0 : i32
    %c0_i32_0 = arith.constant 0 : i32
    %c0_i32_1 = arith.constant 0 : i32
    return %arg0, %c0_i32, %c0_i32_0 : i32, i32, i32
  }
  func.func @transform_1(%arg0: i32) -> (i32, i32, i32) {
    %c0_i32 = arith.constant 0 : i32
    %c0_i32_0 = arith.constant 0 : i32
    %c0_i32_1 = arith.constant 0 : i32
    %c0_i32_2 = arith.constant 0 : i32
    return %c0_i32, %c0_i32_0, %c0_i32_1 : i32, i32, i32
  }
  func.func @transform_2(%arg0: i32) -> (i32, i32) {
    %c0_i32 = arith.constant 0 : i32
    %c0_i32_0 = arith.constant 0 : i32
    %c0_i32_1 = arith.constant 0 : i32
    return %c0_i32, %c0_i32_0 : i32, i32
  }
  func.func @transform_3(%arg0: i32) -> (i32, i32, i32) {
    %c0_i32 = arith.constant 0 : i32
    %c0_i32_0 = arith.constant 0 : i32
    %c0_i32_1 = arith.constant 0 : i32
    return %arg0, %c0_i32, %c0_i32_0 : i32, i32, i32
  }
}

</mosaic_0001>

<bundles_post_ra>
// kernel: tpu_custom_call.1
= control target key start
LH: loop header
LB: loop body
LE: loop exit
PB: predicated region body
PF: predicated region fallthrough
CT: control target
= control target key end

     0   :  { %8 = vsyncpa [#allocation3], 0  ;;  %s1966_s0 = inlined_call_operand.vmem [shape: bf16[2,4,432], index: 0, kind: input, shape index: {}]   ;;  %s1967_s1 = inlined_call_operand.vmem [shape: bf16[9,8,4], index: 1, kind: input, shape index: {}]   ;;  %s1968_s2 = inlined_call_operand.vmem [shape: f32[8,1], index: 2, kind: input, shape index: {}]   ;;  %s1969_s3 = inlined_call_operand.hbm [shape: f32[2,8,384], index: 3, kind: output, shape index: {}]  }
   0x1   :  { %10 = vsyncpa [#allocation3 + $0x1], 0  ;;  %s1742_s12 = smov 0   ;;  %s1744_s13 = smov 0  }
   0x2   :  { %s1746_s14 = smov 0   ;;  %s1748_s15 = smov 0  }
   0x3 LB: > { %s1763_s16 = sadd.s32 4294967295, %s1707_s15   ;;  %s1405_s17 = sadd.s32 4294967294, %s1707_s15   ;;  %s1707_s15 = sphi %s1748_s15, %s1975_s15   ;;  %s1703_s14 = sphi %s1746_s14, %s1974_s14   ;;  %s1699_s13 = sphi %s1744_s13, %s1973_s13   ;;  %s1695_s12 = sphi %s1742_s12, %s1972_s12  }
   0x4   : > { %s1767_s18 = sadd.s32 1, %s1707_s15   ;;  %s91_s19 = sadd.s32 1, %s1703_s14 }
   0x5   : > { %s88_s20 = ssub.s32 %s1707_s15, %s1767_s18  ;;  %p101_p0 = scmp.ne.s32.totalorder %s1703_s14, %s1699_s13 }
   0x6   : > { %p89_p1 = scmp.eq.s32.totalorder %s88_s20, 0  ;;  %p102_p2 = scmp.eq.s32.totalorder %s1763_s16, 1 }
   0x7   : > { %p107_p3 = scmp.ne.s32.totalorder %s1699_s13, %s1695_s12  ;;  %p108_p4 = scmp.eq.s32.totalorder %s1405_s17, 1 }
   0x8   : > { %s1778_s21 = scalar_select %p89_p1, %s1703_s14, %s91_s19  }
   0x9   : > { %p1780_p5 = por %p102_p2, %p101_p0  ;;  %p1784_p6 = por %p108_p4, %p107_p3 }
   0xa   : > { %p1408_p7 = scmp.ge.s32.totalorder %s1707_s15, 1  ;;  %p140_p8 = scmp.lt.s32.totalorder %s1707_s15, 3 }
   0xc   : > { %p141_p9 = pnand %p1408_p7, %p140_p8 }
   0xd   : > { %p164_p10 = scmp.lt.s32.totalorder (!%p141_p9), %s1763_s16, 1  ;;  %v183_v0 = vlaneseq (!%p141_p9)  ;;  %v1709_v1 = vmov (!%p141_p9), 1983009808   ;;  %v1710_v3 = vmov (!%p141_p9), 0.0   ;;  %v1711_v5 = vmov (!%p141_p9), 0   ;;  %s1713_s29 = smov (!%p141_p9), 127  }
   0xe   : > { %144 = sbr.rel (%p141_p9) target bundleno = 468 (0x1d4), region = 32  ;;  %v181_v2 = vunpack.c.l.s4 (!%p141_p9), %v1709_v1  ;;  %1468 = vmatprep.subr.bf16.mxu1 (!%p141_p9), %v1710_v3  ;;  %241 = vmatprep.mubr.bf16.mxu0 (!%p141_p9), %v1711_v5  ;;  %vm1712_vm0 = vmmov (!%p141_p9), 0   ;;  %vm199_vm1 = vcmask (!%p141_p9), 1041408   ;;  %v177_v21 = vld [vmem:[%s1967_s1] sm:$0xf] (!%p141_p9)  ;;  %vm195_vm2 = vcmask (!%p141_p9), 31744  }
   0xf   : > { %v184_v4 = vshrl.u32 (!%p141_p9), %v183_v0, 7  ;;  %1642 = vset.pattern.permute.xlu0 (!%p141_p9), %v1711_v5  ;;  %1470 = vmatprep.mubr.msk.bf16.mxu1 (!%p141_p9), %vm1712_vm0, %v1710_v3  ;;  %s1714_s5 = smov (!%p141_p9), 126   ;;  %s1715_s6 = smov (!%p141_p9), 110   ;;  %v170_v22 = vld [vmem:[%s1968_s2] sm:$0xff] (!%p141_p9)  ;;  %vm322_vm3 = vcmask (!%p141_p9), 1039360   ;;  %vm451_vm4 = vcmask (!%p141_p9), 1031168  }
  0x10   : > { %v182_v6 = vunpack.c.0.s8 (!%p141_p9), %v181_v2  ;;  %s1716_s7 = smov (!%p141_p9), 109   ;;  %s1717_s8 = smov (!%p141_p9), 108   ;;  %v1414_v31 = vld [vmem:[%s1967_s1 + $0x4] sm:$0xf] (!%p141_p9)  ;;  %vm580_vm5 = vcmask (!%p141_p9), 900096   ;;  %vm709_vm6 = vcmask (!%p141_p9), 891904  }
  0x11   : > { %s1718_s9 = smov (!%p141_p9), 92   ;;  %s1719_s10 = smov (!%p141_p9), 91   ;;  %v1418_v44 = vld [vmem:[%s1967_s1 + $0x8] sm:$0xf] (!%p141_p9)  ;;  %v1422_v58 = vld [vmem:[%s1967_s1 + $0xc] sm:$0xf] (!%p141_p9) }
  0x12   : > { %v185_v7 = vsub.s32 (!%p141_p9), %v182_v6, %v184_v4  ;;  %s1720_s11 = smov (!%p141_p9), 90   ;;  %vm838_vm7 = vcmask (!%p141_p9), 883712   ;;  %vm967_vm8 = vcmask (!%p141_p9), 752640   ;;  %vm1096_vm9 = vcmask (!%p141_p9), 744448   ;;  %s161_s17 = sand.u32 (!%p141_p9), 1, %s1699_s13  }
  0x13   : > { %vm1225_vm10 = vcmask (!%p141_p9), 736256   ;;  %s1589_s19 = smul.u32 (!%p141_p9), 24, %s161_s17  ;;  %s1721_s30 = smov (!%p141_p9), [#allocation2]  }
  0x14   : > { %s1590_s20 = smul.u32 (!%p141_p9), 384, %s1763_s16  ;;  %s1649_s4 = sshll.u32 (!%p141_p9), %s1721_s30, 4  ;;  %s1650_s4 = int_to_ptr.vmem [resolvable:$false] %s1649_s4 }
  0x15   : > { %s165_s24 = scalar_select %p164_p10, %s1763_s16, 1 }
  0x16   : > { %s1332_s16 = scalar_lea.sflag [#allocation3], %s161_s17 }
  0x17   : > { %s1449_s25 = sshll.u32 %s165_s24, 3  ;;  %s163_s24 = scalar_lea.vmem [#allocation2], %s1589_s19 }
  0x18   : > { %s168_s28 = scalar_lea.vmem %s1966_s0, %s1449_s25  ;;  %s1346_s25 = sshll.u32 %s163_s24, 4  ;;  %s1926_s25 = int_to_ptr.vmem [resolvable:$true] %s1346_s25 }
  0x19   : > { %v293_v8 = vld [vmem:[%s168_s28] sm:$0xff]  ;;  %p1652_p0 = scmp.lt.s32.totalorder %s1926_s25, %s1650_s4 }
  0x1a   : > { %v176_v9 = vld [vmem:[%s168_s28] sm:$0x3f]  ;;  %v304_v10 = vrot.slane %v293_v8, %v185_v7  ;;  %v297_v11 = vcombine.high %v293_v8, %v293_v8  ;;  %v1426_v8 = vld [vmem:[%s1967_s1 + $0x10] sm:$0xf]  ;;  %s1924_s28 = scalar_lea.hbm %s1969_s3, %s1590_s20 }
  0x1b   : > { %v186_v12 = vrot.slane %v176_v9, %v185_v7  ;;  %v179_v13 = vcombine.high %v176_v9, %v176_v9 }
  0x1c   : > { %314 = vrot.lane.b32.xlu0 %v304_v10, %s1713_s29  ;;  %v312_v14 = vcombine.high %v304_v10, %v304_v10  ;;  %v311_v15 = vrot.slane %v297_v11, %v185_v7 }
  0x1d   : > { %v194_v16 = vcombine.high %v186_v12, %v186_v12  ;;  %v201_v17 = vsel %vm199_vm1, %v186_v12, 0  ;;  %v193_v18 = vrot.slane %v179_v13, %v185_v7 }
  0x1e   : > { %318 = vrot.lane.b32.xlu1 %v311_v15, %s1713_s29  ;;  %v313_v19 = vcombine.high %v311_v15, %v311_v15 }
  0x1f   : > { %1411 = vmatprep.subr.msk.bf16.mxu0 %vm199_vm1, %v194_v16  ;;  %v207_v20 = vsel %vm199_vm1, %v193_v18, 0 }
  0x20   : > { %210 = vmatpush1.bf16.msra.mxu0 %v201_v17  ;;  %316 = vrot.lane.b32.xlu0 %v312_v14, %s1713_s29 }
  0x21   : > { %1469 = vmatpush3.bf16.msra.mxu1 %v207_v20 }
  0x22   : > { %1474 = vmatprep.subr.bf16.mxu1 %v1710_v3  ;;  %320 = vrot.lane.b32.xlu1 %v313_v19, %s1713_s29  ;;  %s1645_s29 = scalar_lea.vmem %s1926_s25, 384 }
  0x23   : > { %1412 = vmatmul.mubr.msk.bf16.vlgmr.msra.gmra.mrb[0].mxu0 %vm195_vm2, %v177_v21  ;;  %p1646_p11 = scmp.ne.s32.totalorder %s1926_s25, %s1645_s29 }
  0x24   : > { %1471 = vmatmul.mubr.msk.bf16.vlgmr.msra.gmra.mrb[0].mxu1 %vm195_vm2, %v177_v21  ;;  %370 = vmatprep.mubr.bf16.mxu0 %v1711_v5 }
  0x25   : > { %443 = vrot.lane.b32.xlu0 %v304_v10, %s1714_s5  ;;  %1476 = vmatprep.mubr.msk.bf16.mxu1 %vm1712_vm0, %v1710_v3  ;;  %p1647_p12 = pnand %p1646_p11, %p1780_p5 }
  0x26   : > { %445 = vrot.lane.b32.xlu1 %v312_v14, %s1714_s5 }
  0x27   : > { %p1648_p13 = pneg %p1647_p12 }
  0x29   : > { %447 = vrot.lane.b32.xlu0 %v311_v15, %s1714_s5 }
  0x2a   : > { %449 = vrot.lane.b32.xlu1 %v313_v19, %s1714_s5  ;;  %s1651_s5 = scalar_lea.vmem %s1650_s4, 768 }
  0x2b   : > { %p1653_p1 = scmp.lt.s32.totalorder %s1651_s5, %s1645_s29 }
  0x2d   : > { %572 = vrot.lane.b32.xlu0 %v304_v10, %s1715_s6  ;;  %p1654_p2 = por %p1653_p1, %p1652_p0 }
  0x2e   : > { %574 = vrot.lane.b32.xlu1 %v312_v14, %s1715_s6 }
  0x2f   : > { %p1655_p3 = pnand %p1654_p2, %p1648_p13 }
  0x31   : > { %576 = vrot.lane.b32.xlu0 %v311_v15, %s1715_s6 }
  0x32   : > { %578 = vrot.lane.b32.xlu1 %v313_v19, %s1715_s6 }
  0x35   : > { %701 = vrot.lane.b32.xlu0 %v304_v10, %s1716_s7 }
  0x36   : > { %703 = vrot.lane.b32.xlu1 %v312_v14, %s1716_s7 }
  0x39   : > { %705 = vrot.lane.b32.xlu0 %v311_v15, %s1716_s7 }
  0x3a   : > { %707 = vrot.lane.b32.xlu1 %v313_v19, %s1716_s7 }
  0x3d   : > { %830 = vrot.lane.b32.xlu0 %v304_v10, %s1717_s8 }
  0x3e   : > { %832 = vrot.lane.b32.xlu1 %v312_v14, %s1717_s8 }
  0x41   : > { %834 = vrot.lane.b32.xlu0 %v311_v15, %s1717_s8 }
  0x42   : > { %836 = vrot.lane.b32.xlu1 %v313_v19, %s1717_s8 }
  0x45   : > { %959 = vrot.lane.b32.xlu0 %v304_v10, %s1718_s9 }
  0x46   : > { %961 = vrot.lane.b32.xlu1 %v312_v14, %s1718_s9 }
  0x49   : > { %963 = vrot.lane.b32.xlu0 %v311_v15, %s1718_s9 }
  0x4a   : > { %965 = vrot.lane.b32.xlu1 %v313_v19, %s1718_s9 }
  0x4d   : > { %1088 = vrot.lane.b32.xlu0 %v304_v10, %s1719_s10 }
  0x4e   : > { %1090 = vrot.lane.b32.xlu1 %v312_v14, %s1719_s10 }
  0x51   : > { %1092 = vrot.lane.b32.xlu0 %v311_v15, %s1719_s10 }
  0x52   : > { %1094 = vrot.lane.b32.xlu1 %v313_v19, %s1719_s10 }
  0x55   : > { %1217 = vrot.lane.b32.xlu0 %v304_v10, %s1720_s11 }
  0x56   : > { %1219 = vrot.lane.b32.xlu1 %v312_v14, %s1720_s11 }
  0x59   : > { %1221 = vrot.lane.b32.xlu0 %v311_v15, %s1720_s11 }
  0x5a   : > { %1223 = vrot.lane.b32.xlu1 %v313_v19, %s1720_s11  ;;  %v1430_v19 = vld [vmem:[%s1967_s1 + $0x14] sm:$0xf] }
  0x5d   : > { %173 = vperm.xlu0 %1642, %v170_v22  }
  0x8e   : > { %v315_v23 = vpop.permute.xlu0 %314 }
  0x90   : > { %v319_v24 = vpop.permute.xlu1 %318 }
  0x92   : > { %v317_v25 = vpop.permute.xlu0 %316 }
  0x93   : > { %v323_v26 = vsel %vm322_vm3, %v315_v23, %v317_v25  ;;  %v324_v27 = vsel %vm322_vm3, %v317_v25, %v319_v24 }
  0x94   : > { %v330_v28 = vsel %vm199_vm1, %v323_v26, 0  ;;  %v321_v29 = vpop.permute.xlu1 %320  ;;  %1415 = vmatprep.subr.msk.bf16.mxu0 %vm199_vm1, %v324_v27 }
  0x95   : > { %v325_v30 = vsel %vm322_vm3, %v319_v24, %v321_v29  ;;  %339 = vmatpush1.bf16.msra.mxu0 %v330_v28  ;;  %v1434_v29 = vld [vmem:[%s1967_s1 + $0x18] sm:$0xf] }
  0x96   : > { %v336_v32 = vsel %vm199_vm1, %v325_v30, 0 }
  0x97   : > { %v444_v33 = vpop.permute.xlu0 %443  ;;  %1475 = vmatpush3.bf16.msra.mxu1 %v336_v32 }
  0x98   : > { %1416 = vmatmul.mubr.msk.bf16.vlgmr.msra.gmra.mrb[0].mxu0 %vm195_vm2, %v1414_v31  ;;  %v446_v34 = vpop.permute.xlu1 %445  ;;  %1480 = vmatprep.subr.bf16.mxu1 %v1710_v3 }
  0x99   : > { %v452_v35 = vsel %vm451_vm4, %v444_v33, %v446_v34  ;;  %499 = vmatprep.mubr.bf16.mxu0 %v1711_v5 }
  0x9a   : > { %1477 = vmatmul.mubr.msk.bf16.vlgmr.msra.gmra.mrb[0].mxu1 %vm195_vm2, %v1414_v31  ;;  %v459_v37 = vsel %vm199_vm1, %v452_v35, 0 }
  0x9b   : > { %v448_v36 = vpop.permute.xlu0 %447  ;;  %1482 = vmatprep.mubr.msk.bf16.mxu1 %vm1712_vm0, %v1710_v3 }
  0x9c   : > { %v453_v38 = vsel %vm451_vm4, %v446_v34, %v448_v36  ;;  %v450_v39 = vpop.permute.xlu1 %449 }
  0x9d   : > { %1419 = vmatprep.subr.msk.bf16.mxu0 %vm199_vm1, %v453_v38  ;;  %v454_v40 = vsel %vm451_vm4, %v448_v36, %v450_v39  ;;  %v1438_v36 = vld [vmem:[%s1967_s1 + $0x1c] sm:$0xf] }
  0x9e   : > { %468 = vmatpush1.bf16.msra.mxu0 %v459_v37  ;;  %v465_v41 = vsel %vm199_vm1, %v454_v40, 0  ;;  %v1442_v40 = vld [vmem:[%s1967_s1 + $0x20] sm:$0xf] }
  0x9f   : > { %v573_v42 = vpop.permute.xlu0 %572  ;;  %1481 = vmatpush3.bf16.msra.mxu1 %v465_v41 }
  0xa0   : > { %v575_v43 = vpop.permute.xlu1 %574  ;;  %1486 = vmatprep.subr.bf16.mxu1 %v1710_v3 }
  0xa1   : > { %v581_v45 = vsel %vm580_vm5, %v573_v42, %v575_v43 }
  0xa2   : > { %v588_v47 = vsel %vm199_vm1, %v581_v45, 0 }
  0xa3   : > { %v577_v46 = vpop.permute.xlu0 %576 }
  0xa4   : > { %v582_v48 = vsel %vm580_vm5, %v575_v43, %v577_v46  ;;  %1420 = vmatmul.mubr.msk.bf16.vlgmr.msra.gmra.mrb[0].mxu0 %vm195_vm2, %v1418_v44  ;;  %v579_v49 = vpop.permute.xlu1 %578 }
  0xa5   : > { %1423 = vmatprep.subr.msk.bf16.mxu0 %vm199_vm1, %v582_v48  ;;  %v583_v50 = vsel %vm580_vm5, %v577_v46, %v579_v49  ;;  %628 = vmatprep.mubr.bf16.mxu0 %v1711_v5 }
  0xa6   : > { %597 = vmatpush1.bf16.msra.mxu0 %v588_v47  ;;  %1483 = vmatmul.mubr.msk.bf16.vlgmr.msra.gmra.mrb[0].mxu1 %vm195_vm2, %v1418_v44  ;;  %v594_v51 = vsel %vm199_vm1, %v583_v50, 0 }
  0xa7   : > { %v702_v52 = vpop.permute.xlu0 %701  ;;  %1487 = vmatpush3.bf16.msra.mxu1 %v594_v51  ;;  %1488 = vmatprep.mubr.msk.bf16.mxu1 %vm1712_vm0, %v1710_v3 }
  0xa8   : > { %v704_v53 = vpop.permute.xlu1 %703  ;;  %1492 = vmatprep.subr.bf16.mxu1 %v1710_v3 }
  0xa9   : > { %v710_v55 = vsel %vm709_vm6, %v702_v52, %v704_v53 }
  0xaa   : > { %v717_v60 = vsel %vm199_vm1, %v710_v55, 0 }
  0xab   : > { %v706_v54 = vpop.permute.xlu0 %705 }
  0xac   : > { %v711_v56 = vsel %vm709_vm6, %v704_v53, %v706_v54  ;;  %v708_v57 = vpop.permute.xlu1 %707 }
  0xad   : > { %1427 = vmatprep.subr.msk.bf16.mxu0 %vm199_vm1, %v711_v56  ;;  %v712_v59 = vsel %vm709_vm6, %v706_v54, %v708_v57 }
  0xae   : > { %v723_v62 = vsel %vm199_vm1, %v712_v59, 0 }
  0xaf   : > { %v831_v61 = vpop.permute.xlu0 %830 }
  0xb0   : > { %1424 = vmatmul.mubr.msk.bf16.vlgmr.msra.gmra.mrb[0].mxu0 %vm195_vm2, %v1422_v58  ;;  %v833_v63 = vpop.permute.xlu1 %832 }
  0xb1   : > { %726 = vmatpush1.bf16.msra.mxu0 %v717_v60  ;;  %757 = vmatprep.mubr.bf16.mxu0 %v1711_v5  ;;  %v839_v6 = vsel %vm838_vm7, %v831_v61, %v833_v63 }
  0xb2   : > { %1489 = vmatmul.mubr.msk.bf16.vlgmr.msra.gmra.mrb[0].mxu1 %vm195_vm2, %v1422_v58  ;;  %v846_v10 = vsel %vm199_vm1, %v839_v6, 0 }
  0xb3   : > { %v835_v0 = vpop.permute.xlu0 %834  ;;  %1493 = vmatpush3.bf16.msra.mxu1 %v723_v62  ;;  %1494 = vmatprep.mubr.msk.bf16.mxu1 %vm1712_vm0, %v1710_v3 }
  0xb4   : > { %v840_v1 = vsel %vm838_vm7, %v833_v63, %v835_v0  ;;  %v837_v2 = vpop.permute.xlu1 %836  ;;  %1498 = vmatprep.subr.bf16.mxu1 %v1710_v3 }
  0xb5   : > { %1431 = vmatprep.subr.msk.bf16.mxu0 %vm199_vm1, %v840_v1  ;;  %v841_v9 = vsel %vm838_vm7, %v835_v0, %v837_v2 }
  0xb6   : > { %v852_v13 = vsel %vm199_vm1, %v841_v9, 0 }
  0xb7   : > { %v960_v4 = vpop.permute.xlu0 %959 }
  0xb8   : > { %v962_v7 = vpop.permute.xlu1 %961 }
  0xb9   : > { %v968_v16 = vsel %vm967_vm8, %v960_v4, %v962_v7 }
  0xba   : > { %v975_v21 = vsel %vm199_vm1, %v968_v16, 0 }
  0xbb   : > { %v964_v11 = vpop.permute.xlu0 %963 }
  0xbc   : > { %v969_v12 = vsel %vm967_vm8, %v962_v7, %v964_v11  ;;  %1428 = vmatmul.mubr.msk.bf16.vlgmr.msra.gmra.mrb[0].mxu0 %vm195_vm2, %v1426_v8  ;;  %v966_v15 = vpop.permute.xlu1 %965 }
  0xbd   : > { %855 = vmatpush1.bf16.msra.mxu0 %v846_v10  ;;  %886 = vmatprep.mubr.bf16.mxu0 %v1711_v5  ;;  %v970_v20 = vsel %vm967_vm8, %v964_v11, %v966_v15 }
  0xbe   : > { %1495 = vmatmul.mubr.msk.bf16.vlgmr.msra.gmra.mrb[0].mxu1 %vm195_vm2, %v1426_v8  ;;  %1435 = vmatprep.subr.msk.bf16.mxu0 %vm199_vm1, %v969_v12  ;;  %v981_v23 = vsel %vm199_vm1, %v970_v20, 0 }
  0xbf   : > { %v1089_v14 = vpop.permute.xlu0 %1088  ;;  %1499 = vmatpush3.bf16.msra.mxu1 %v852_v13  ;;  %1500 = vmatprep.mubr.msk.bf16.mxu1 %vm1712_vm0, %v1710_v3 }
  0xc0   : > { %1504 = vmatprep.subr.bf16.mxu1 %v1710_v3  ;;  %v1091_v18 = vpop.permute.xlu1 %1090 }
  0xc1   : > { %v1097_v26 = vsel %vm1096_vm9, %v1089_v14, %v1091_v18 }
  0xc2   : > { %v1104_v31 = vsel %vm199_vm1, %v1097_v26, 0 }
  0xc3   : > { %v1093_v17 = vpop.permute.xlu0 %1092 }
  0xc4   : > { %v1098_v22 = vsel %vm1096_vm9, %v1091_v18, %v1093_v17  ;;  %v1095_v25 = vpop.permute.xlu1 %1094 }
  0xc5   : > { %v1099_v30 = vsel %vm1096_vm9, %v1093_v17, %v1095_v25 }
  0xc6   : > { %v1110_v33 = vsel %vm199_vm1, %v1099_v30, 0 }
  0xc7   : > { %v1218_v24 = vpop.permute.xlu0 %1217 }
  0xc8   : > { %1432 = vmatmul.mubr.msk.bf16.vlgmr.msra.gmra.mrb[0].mxu0 %vm195_vm2, %v1430_v19  ;;  %v1220_v28 = vpop.permute.xlu1 %1219 }
  0xc9   : > { %984 = vmatpush1.bf16.msra.mxu0 %v975_v21  ;;  %1015 = vmatprep.mubr.bf16.mxu0 %v1711_v5  ;;  %v1226_v35 = vsel %vm1225_vm10, %v1218_v24, %v1220_v28 }
  0xca   : > { %1501 = vmatmul.mubr.msk.bf16.vlgmr.msra.gmra.mrb[0].mxu1 %vm195_vm2, %v1430_v19  ;;  %1439 = vmatprep.subr.msk.bf16.mxu0 %vm199_vm1, %v1098_v22  ;;  %v1233_v38 = vsel %vm199_vm1, %v1226_v35, 0 }
  0xcb   : > { %1505 = vmatpush3.bf16.msra.mxu1 %v981_v23  ;;  %1506 = vmatprep.mubr.msk.bf16.mxu1 %vm1712_vm0, %v1710_v3  ;;  %v1222_v27 = vpop.permute.xlu0 %1221 }
  0xcc   : > { %1510 = vmatprep.subr.bf16.mxu1 %v1710_v3  ;;  %v1227_v32 = vsel %vm1225_vm10, %v1220_v28, %v1222_v27  ;;  %v1224_v34 = vpop.permute.xlu1 %1223 }
  0xcd   : > { %v1228_v37 = vsel %vm1225_vm10, %v1222_v27, %v1224_v34 }
  0xce   : > { %v1239_v39 = vsel %vm199_vm1, %v1228_v37, 0 }
  0xd4   : > { %1436 = vmatmul.mubr.msk.bf16.vlgmr.msra.gmra.mrb[0].mxu0 %vm195_vm2, %v1434_v29 }
  0xd5   : > { %1113 = vmatpush1.bf16.msra.mxu0 %v1104_v31  ;;  %1144 = vmatprep.mubr.bf16.mxu0 %v1711_v5 }
  0xd6   : > { %1507 = vmatmul.mubr.msk.bf16.vlgmr.msra.gmra.mrb[0].mxu1 %vm195_vm2, %v1434_v29  ;;  %1443 = vmatprep.subr.msk.bf16.mxu0 %vm199_vm1, %v1227_v32 }
  0xd7   : > { %1511 = vmatpush3.bf16.msra.mxu1 %v1110_v33  ;;  %1512 = vmatprep.mubr.msk.bf16.mxu1 %vm1712_vm0, %v1710_v3 }
  0xd8   : > { %1516 = vmatprep.subr.bf16.mxu1 %v1710_v3 }
  0xdc   : > { %v174_v41 = vpop.permute.xlu0 %173 }
  0xe0   : > { %1440 = vmatmul.mubr.msk.bf16.vlgmr.msra.gmra.mrb[0].mxu0 %vm195_vm2, %v1438_v36 }
  0xe1   : > { %1242 = vmatpush1.bf16.msra.mxu0 %v1233_v38  ;;  %1273 = vmatprep.mubr.bf16.mxu0 %v1711_v5 }
  0xe2   : > { %1513 = vmatmul.mubr.msk.bf16.vlgmr.msra.gmra.mrb[0].mxu1 %vm195_vm2, %v1438_v36 }
  0xe3   : > { %1517 = vmatpush3.bf16.msra.mxu1 %v1239_v39  ;;  %1518 = vmatprep.mubr.msk.bf16.mxu1 %vm1712_vm0, %v1710_v3 }
  0xec   : > { %1444 = vmatmul.mubr.msk.bf16.vlgmr.msra.gmra.mrb[0].mxu0 %vm195_vm2, %v1442_v40 }
  0xee   : > { %1519 = vmatmul.mubr.msk.bf16.vlgmr.msra.gmra.mrb[0].mxu1 %vm195_vm2, %v1442_v40 }
 0x1bf   : > { %v1275_v42 = vpop.f32.mrb[0].mxu0 }
 0x1c0   : > { %v1522_v43 = vadd.f32 %v1275_v42, %v174_v41  ;;  %v1277_v5 = vpop.f32.mrb[1].mxu0 }
 0x1c1   : > { %v1523_v44 = vadd.f32 %v1277_v5, %v174_v41  ;;  %v1279_v45 = vpop.f32.mrb[2].mxu0  ;;  %v1316_v46 = vpop.f32.mrb[0].mxu1 }
 0x1c2   : > { %v1325_v3 = vmax.f32 %v1522_v43, 0.0  ;;  %v1524_v47 = vadd.f32 %v1316_v46, %v174_v41  ;;  %v1280_v48 = vpop.f32.mrb[3].mxu0  ;;  %v1520_v49 = vpop.f32.mrb[1].mxu1 }
 0x1c3   : > { %v1326_v50 = vmax.f32 %v1523_v44, 0.0  ;;  %v1319_v51 = vpop.f32.mrb[2].mxu1 }
 0x1c4   : > { %1328 = vst [vmem:[%s163_s24] sm:$0xff] %v1325_v3  ;;  %v1327_v52 = vmax.f32 %v1524_v47, 0.0  ;;  %v1521_v53 = vpop.f32.mrb[3].mxu1 }
 0x1c5   : > { %1329 = vst [vmem:[%s163_s24 + $0x8] sm:$0xff] %v1326_v50 }
 0x1c6   : > { %1330 = vst [vmem:[%s163_s24 + $0x10] sm:$0xff] %v1327_v52 }
 0x1c7   : > { %1658 = shalt.err (!%p1655_p3)
}
 0x1c8   : > { %s1659_s6 = scalar_lea.hbm %s1924_s28, 384  ;;  %s1663_s9 = scalar_lea.hbm %s1969_s3, 768 }
 0x1c9   : > { %p1660_p4 = scmp.ne.s32.totalorder %s1924_s28, %s1659_s6  ;;  %p1664_p9 = scmp.lt.u32.totalorder %s1924_s28, %s1969_s3 }
 0x1ca   : > { %p1665_p10 = scmp.lt.u32.totalorder %s1663_s9, %s1659_s6  ;;  %p1667_p12 = scmp.lt.u32.totalorder %s1659_s6, %s1924_s28 }
 0x1cb   : > { %p1661_p7 = pnand %p1660_p4, %p1780_p5 }
 0x1cc   : > { %p1666_p11 = por %p1665_p10, %p1664_p9 }
 0x1cd   : > { %p1662_p8 = pneg %p1661_p7 }
 0x1ce   : > { %p1668_p13 = por %p1667_p12, %p1666_p11 }
 0x1d0   : > { %p1669_p0 = pnand %p1668_p13, %p1662_p8 }
 0x1d2   : > { %1672 = shalt.err (!%p1669_p0)
}
 0x1d3   : > { %1591 = dma.vmem_to_hbm [thread:$0]  (%p1780_p5), %s1926_s25, 384, %s1924_s28, %s1332_s16  }
 0x1d4 PF: > { %p1597_p1 = scmp.ge.s32.totalorder %s1707_s15, 2  ;;  %s1358_s17 = sand.u32 1, %s1695_s12  }
 0x1d5   : > { %s1359_s19 = scalar_lea.sflag [#allocation3], %s1358_s17 }
 0x1d6   : > { %p1594_p2 = pnand %p1597_p1, %p1784_p6 }
 0x1d8   : > { %1690 = dma.done.wait (!%p1594_p2), %s1359_s19, 384  }
 0x1d9   : > { %1692 = vsyncadd (!%p1594_p2), %s1359_s19, 4294966912  ;;  %p13_p3 = scmp.ge.s32.totalorder %s1767_s18, 4   ;;  %s1972_s12 = smov %s1699_s13 }
 0x1da   : > { %s1973_s13 = smov %s1703_s14  ;;  %s1974_s14 = smov %s1778_s21 }
 0x1db   : > { %s1975_s15 = smov %s1767_s18  ;;  %15 = sbr.rel (!%p13_p3) target bundleno = 3 (0x3), region = 75 }
 0x1e2   :  { %1364 = vsyncpa [#allocation3], 1 }
 0x1e3   :  { %1366 = vsyncpa [#allocation3 + $0x1], 1 }

</bundles_post_ra>
